<compile_context>
chip_gen: v5e
topology: v5e:2x2
jax: 0.10.0
libtpu: 0.0.40
codegen_flags: <defaults>
</compile_context>

<pallas_src>
import numpy as np
import jax
import jax.numpy as jnp
from jax import lax
from jax.experimental import pallas as pl
from jax.experimental.pallas import tpu as pltpu


def _round_up(x, m):
    return ((x + m - 1) // m) * m


def _cdiv(a, b):
    return (a + b - 1) // b


# ----------------------------- kernel builder --------------------------------


def _make_kernel(has_bias, acc_in_out, cast_dtype):
    """Build the kernel body.

    has_bias:   a (1, tn) bias block is present.
    acc_in_out: accumulate directly into the f32 output block (resident across
                the K grid axis) instead of a separate VMEM scratch.
    cast_dtype: None -> feed the MXU in f32; otherwise cast x and the squared
                weights to this dtype right before the matmul (square in f32
                first so the weights are only rounded once).
    """

    def kernel(*refs):
        if has_bias:
            x_ref, w_ref, b_ref = refs[:3]
            rest = refs[3:]
        else:
            x_ref, w_ref = refs[:2]
            b_ref = None
            rest = refs[2:]
        if acc_in_out:
            (o_ref,) = rest
            acc_ref = o_ref
        else:
            o_ref, acc_ref = rest

        k = pl.program_id(2)

        @pl.when(k == 0)
        def _init():
            if acc_in_out and has_bias:
                # Fold the bias into the accumulator init (no finalize needed).
                acc_ref[...] = jnp.broadcast_to(
                    b_ref[...].astype(jnp.float32), acc_ref.shape)
            else:
                acc_ref[...] = jnp.zeros_like(acc_ref)

        # Square the weights on the VPU (hidden under the MXU slot).  Square in
        # f32, then (optionally) cast to the MXU feed dtype; accumulate in f32.
        w2 = w_ref[...].astype(jnp.float32)
        w2 = w2 * w2                                          # (tn, tk)
        xv = x_ref[...]
        if cast_dtype is not None:
            w2 = w2.astype(cast_dtype)
            xv = xv.astype(cast_dtype)
        acc_ref[...] += lax.dot_general(
            xv, w2,                                           # (tm,tk) x (tn,tk)
            dimension_numbers=(((1,), (1,)), ((), ())),       # contract last dims
            preferred_element_type=jnp.float32)               # -> (tm, tn)

        if not acc_in_out:
            @pl.when(k == pl.num_programs(2) - 1)
            def _finalize():
                acc = acc_ref[...]
                if has_bias:
                    acc = acc + b_ref[...].astype(jnp.float32)
                o_ref[...] = acc.astype(o_ref.dtype)

    return kernel


# ----------------------------- wrapper ----------------------------------------


def positive_linear(x, log_weight, bias=None, *, tm=None, tn=None, tk=None,
                    mxu_dtype=None):
    """x: [B, in], log_weight: [out, in], bias: [out] or None -> [B, out]."""
    B, K = x.shape
    N, K2 = log_weight.shape
    assert K == K2, (K, K2)
    out_dtype = x.dtype

    # MXU feed dtype: bf16 when inputs are already bf16 (v6e/v7x fast path),
    # f32 otherwise so the default exactly matches the PyTorch module.
    if mxu_dtype is None:
        mxu_dtype = jnp.bfloat16 if x.dtype == jnp.bfloat16 else jnp.float32
    cast_dtype = None if jnp.dtype(mxu_dtype) == jnp.dtype(jnp.float32) \
        else jnp.dtype(mxu_dtype)

    Mp8 = _round_up(B, 8)
    Np128 = _round_up(N, 128)
    Kp128 = _round_up(K, 128)

    # ---- tile selection ------------------------------------------------------
    # Large tiles: arithmetic intensity ~ tm*tn/(tm+tn).  Default 512x512x1024
    # f32 tiles use ~11 MiB of double-buffered VMEM, well inside the budget,
    # with ~2x the FLOP/byte of 256-tiles and far fewer grid steps.
    if tm is None:
        if Mp8 <= 1024:
            tm = Mp8                       # collapse M: each weight tile DMA'd once
        else:
            tm = _round_up(_cdiv(B, _cdiv(B, 512)), 8)   # balanced ~512-row tiles
    tm = max(8, min(_round_up(tm, 8), Mp8))

    if tn is None:
        tn = 512                           # multiple of 256 fills the v6e/v7x MXU
    tn = max(128, min(_round_up(tn, 128), Np128))

    if tk is None:
        tk = 1024
    tk = max(128, min(_round_up(tk, 128), Kp128))

    # v7x megacore: ensure the parallel (i, j) grid has >= 2 iterations when
    # possible so dimension_semantics shards work across both TensorCores.
    if _cdiv(Mp8, tm) == 1 and _cdiv(Np128, tn) == 1 and Np128 >= 256:
        tn = max(128, _round_up(Np128 // 2, 128))

    # ---- VMEM budget from the actual chip (75% of physical capacity) ---------
    try:
        vmem_cap = int(pltpu.get_tpu_info().vmem_capacity_bytes)
    except Exception:
        vmem_cap = 64 * 2 ** 20            # v7x floor
    vmem_limit = int(0.75 * vmem_cap)

    x_isz = jnp.dtype(x.dtype).itemsize
    w_isz = jnp.dtype(log_weight.dtype).itemsize
    o_isz = jnp.dtype(out_dtype).itemsize
    acc_in_out = (jnp.dtype(out_dtype) == jnp.dtype(jnp.float32))

    def _footprint(tm_, tn_, tk_):
        est = 2 * (tm_ * tk_ * x_isz + tn_ * tk_ * w_isz)   # dbl-buffered inputs
        est += 2 * tm_ * tn_ * o_isz                          # output
        est += 2 * tn_ * 4                                    # bias blocks
        if not acc_in_out:
            est += tm_ * tn_ * 4                              # f32 scratch
        return est

    # Safety net for caller-supplied oversized tiles.
    while _footprint(tm, tn, tk) > 0.7 * vmem_limit and tk > 128:
        tk = max(128, _round_up(tk // 2, 128))
    while _footprint(tm, tn, tk) > 0.7 * vmem_limit and tn > 128:
        tn = max(128, _round_up(tn // 2, 128))

    # ---- padding (exact: 0**2 contributes nothing; extra rows/cols sliced) ---
    Mp = _round_up(B, tm)
    Np = _round_up(N, tn)
    Kp = _round_up(K, tk)

    xp = x if (Mp == B and Kp == K) else jnp.pad(x, ((0, Mp - B), (0, Kp - K)))
    wp = (log_weight if (Np == N and Kp == K)
          else jnp.pad(log_weight, ((0, Np - N), (0, Kp - K))))

    grid = (Mp // tm, Np // tn, Kp // tk)

    x_spec = pl.BlockSpec((tm, tk), lambda i, j, k: (i, k))
    w_spec = pl.BlockSpec((tn, tk), lambda i, j, k: (j, k))
    o_spec = pl.BlockSpec((tm, tn), lambda i, j, k: (i, j))

    has_bias = bias is not None
    in_specs = [x_spec, w_spec]
    operands = [xp, wp]
    if has_bias:
        bp = bias.reshape(1, N)
        if Np != N:
            bp = jnp.pad(bp, ((0, 0), (0, Np - N)))
        # Block index ignores k -> revisit detection DMAs it once per (i, j).
        in_specs.append(pl.BlockSpec((1, tn), lambda i, j, k: (0, j)))
        operands.append(bp)

    scratch = [] if acc_in_out else [pltpu.VMEM((tm, tn), jnp.float32)]

    cost = pl.CostEstimate(
        flops=2 * Mp * Np * Kp + Np * Kp,          # matmul + weight squaring
        transcendentals=0,
        bytes_accessed=(Mp * Kp * x_isz + Np * Kp * w_isz + Mp * Np * o_isz
                        + (Np * 4 if has_bias else 0)))

    kernel = _make_kernel(has_bias, acc_in_out, cast_dtype)

    yp = pl.pallas_call(
        kernel,
        out_shape=jax.ShapeDtypeStruct((Mp, Np), out_dtype),
        grid_spec=pltpu.PrefetchScalarGridSpec(
            num_scalar_prefetch=0,
            grid=grid,
            in_specs=in_specs,
            out_specs=o_spec,
            scratch_shapes=scratch),
        compiler_params=pltpu.CompilerParams(
            dimension_semantics=("parallel", "parallel", "arbitrary"),
            vmem_limit_bytes=vmem_limit),
        cost_estimate=cost,
    )(*operands)

    if Mp != B or Np != N:
        yp = yp[:B, :N]
    return yp


# ----------------------------- init -------------------------------------------


def init_positive_linear_params(key, in_features, out_features, bias=False):
    """Mirror PyTorch reset_parameters: xavier_uniform_ then abs().sqrt();
       bias ~ U(-b, b) with b = sqrt(1/sqrt(fan_in))."""
    k_w, k_b = jax.random.split(key)
    a = np.sqrt(6.0 / (in_features + out_features))
    log_w = jax.random.uniform(k_w, (out_features, in_features),
                               dtype=jnp.float32, minval=-a, maxval=a)
    log_w = jnp.sqrt(jnp.abs(log_w))
    if bias:
        bound = np.sqrt(1.0 / np.sqrt(in_features))
        b = jax.random.uniform(k_b, (out_features,), dtype=jnp.float32,
                               minval=-bound, maxval=bound)
    else:
        b = None
    return log_w, b


# ----------------------------- test --------------------------------------------


if __name__ == "__main__":
    key = jax.random.PRNGKey(0)
    k_x, k_p1, k_p2, k_x2, k_p3, k_x3 = jax.random.split(key, 6)

    # Small shapes matching the module defaults (single tile, f32 acc-in-output).
    batch, in_features, out_features = 8, 32, 16
    x = jax.random.normal(k_x, (batch, in_features), dtype=jnp.float32)

    # no-bias variant (module default)
    log_w, _ = init_positive_linear_params(k_p1, in_features, out_features, bias=False)
    y = positive_linear(x, log_w, None)
    jax.block_until_ready(y)
    y_ref = np.asarray(x, np.float64) @ (np.asarray(log_w, np.float64) ** 2).T
    np.testing.assert_allclose(np.asarray(y), y_ref, rtol=1e-5, atol=1e-5)

    # bias variant
    log_w_b, b = init_positive_linear_params(k_p2, in_features, out_features, bias=True)
    y_b = positive_linear(x, log_w_b, b)
    jax.block_until_ready(y_b)
    y_b_ref = (np.asarray(x, np.float64) @ (np.asarray(log_w_b, np.float64) ** 2).T
               + np.asarray(b, np.float64)[None, :])
    np.testing.assert_allclose(np.asarray(y_b), y_b_ref, rtol=1e-5, atol=1e-5)

    # Multi-tile path: exercises M/N/K tiling, K accumulation, padding, bias init.
    B2, in2, out2 = 96, 200, 72
    x2 = jax.random.normal(k_x2, (B2, in2), dtype=jnp.float32)
    log_w2, b2 = init_positive_linear_params(k_p3, in2, out2, bias=True)
    y2 = positive_linear(x2, log_w2, b2, tm=64, tn=128, tk=128)
    jax.block_until_ready(y2)
    y2_ref = (np.asarray(x2, np.float64) @ (np.asarray(log_w2, np.float64) ** 2).T
              + np.asarray(b2, np.float64)[None, :])
    np.testing.assert_allclose(np.asarray(y2), y2_ref, rtol=1e-5, atol=1e-4)

    # bf16 fast path (v6e/v7x MXU): square in f32, cast to bf16 before the MXU,
    # f32 accumulation, narrow-dtype output via the scratch/finalize path.
    x3 = jax.random.normal(k_x3, (16, 256), dtype=jnp.bfloat16)
    log_w3, b3 = init_positive_linear_params(k_p2, 256, 128, bias=True)
    log_w3 = log_w3.astype(jnp.bfloat16)
    y3 = positive_linear(x3, log_w3, b3)
    jax.block_until_ready(y3)
    x3_f = np.asarray(x3.astype(jnp.float32), np.float64)
    w3_f = np.asarray(log_w3.astype(jnp.float32), np.float64)
    y3_ref = x3_f @ (w3_f ** 2).T + np.asarray(b3, np.float64)[None, :]
    np.testing.assert_allclose(np.asarray(y3.astype(jnp.float32), np.float64),
                               y3_ref, rtol=5e-2, atol=5e-2)

    print("KERNEL_OK")
</pallas_src>

<mosaic_0001>
module attributes {stable_mosaic.version = 11 : i64} {
  func.func @kernel(%arg0: i32, %arg1: i32, %arg2: i32, %arg3: memref<8x128xf32, #tpu.memory_space<vmem>>, %arg4: memref<128x128xf32, #tpu.memory_space<vmem>>, %arg5: memref<8x128xf32, #tpu.memory_space<vmem>>) attributes {dimension_semantics = [#tpu.dimension_semantics<parallel>, #tpu.dimension_semantics<parallel>, #tpu.dimension_semantics<arbitrary>], iteration_bounds = array<i64: 1, 1, 1>, scalar_prefetch = 0 : i64, scratch_operands = 0 : i64, tpu.core_type = #tpu.core_type<tc>, window_params = [{transform_indices = @transform_0, window_bounds = array<i64: 8, 128>}, {transform_indices = @transform_1, window_bounds = array<i64: 128, 128>}, {transform_indices = @transform_2, window_bounds = array<i64: 8, 128>}]} {
    %c0_i32 = arith.constant 0 : i32
    %0 = arith.cmpi eq, %arg2, %c0_i32 : i32
    %1 = arith.extui %0 : i1 to i32
    %c0_i32_0 = arith.constant 0 : i32
    %2 = arith.cmpi ne, %1, %c0_i32_0 : i32
    scf.if %2 {
      %cst_8 = arith.constant 0.000000e+00 : f32
      %10 = vector.broadcast %cst_8 : f32 to vector<8x128xf32>
      %c0_9 = arith.constant 0 : index
      %c0_10 = arith.constant 0 : index
      %11 = vector.load %arg5[%c0_9, %c0_10] : memref<8x128xf32, #tpu.memory_space<vmem>>, vector<8x128xf32>
      tpu.vector_store %arg5[%c0_9, %c0_10], %10 {strides = array<i32>} : memref<8x128xf32, #tpu.memory_space<vmem>>, vector<8x128xf32>,
    } else {
    }
    %c0 = arith.constant 0 : index
    %c0_1 = arith.constant 0 : index
    %3 = vector.load %arg4[%c0, %c0_1] : memref<128x128xf32, #tpu.memory_space<vmem>>, vector<128x128xf32>
    %4 = arith.mulf %3, %3 : vector<128x128xf32>
    %c0_2 = arith.constant 0 : index
    %c0_3 = arith.constant 0 : index
    %5 = vector.load %arg3[%c0_2, %c0_3] : memref<8x128xf32, #tpu.memory_space<vmem>>, vector<8x128xf32>
    %c0_4 = arith.constant 0 : index
    %c0_5 = arith.constant 0 : index
    %6 = vector.load %arg5[%c0_4, %c0_5] : memref<8x128xf32, #tpu.memory_space<vmem>>, vector<8x128xf32>
    %cst = arith.constant dense<0.000000e+00> : vector<8x128xf32>
    %7 = tpu.matmul %5, %4, %cst {dimension_numbers = #tpu.dot_dimension_numbers<[1], [1], [0], [0], [0, 0, 1, 0], [], []>} : vector<8x128xf32>, vector<128x128xf32>, vector<8x128xf32> -> vector<8x128xf32>
    %8 = arith.addf %6, %7 : vector<8x128xf32>
    %c0_6 = arith.constant 0 : index
    %c0_7 = arith.constant 0 : index
    %9 = vector.load %arg5[%c0_6, %c0_7] : memref<8x128xf32, #tpu.memory_space<vmem>>, vector<8x128xf32>
    tpu.vector_store %arg5[%c0_6, %c0_7], %8 {strides = array<i32>} : memref<8x128xf32, #tpu.memory_space<vmem>>, vector<8x128xf32>,
    return
  }
  func.func @transform_0(%arg0: i32, %arg1: i32, %arg2: i32) -> (i32, i32) {
    %c0_i32 = arith.constant 0 : i32
    return %arg0, %arg2 : i32, i32
  }
  func.func @transform_1(%arg0: i32, %arg1: i32, %arg2: i32) -> (i32, i32) {
    %c0_i32 = arith.constant 0 : i32
    return %arg1, %arg2 : i32, i32
  }
  func.func @transform_2(%arg0: i32, %arg1: i32, %arg2: i32) -> (i32, i32) {
    %c0_i32 = arith.constant 0 : i32
    return %arg0, %arg1 : i32, i32
  }
}

</mosaic_0001>

<bundles_post_ra>
// kernel: tpu_custom_call.1
= control target key start
LH: loop header
LB: loop body
LE: loop exit
PB: predicated region body
PF: predicated region fallthrough
CT: control target
= control target key end

     0   :  { %7 = vsyncpa [#allocation3], 0  ;;  %s234_s0 = inlined_call_operand.hbm [shape: f32[8,128], index: 0, kind: input, shape index: {}]   ;;  %s235_s1 = inlined_call_operand.hbm [shape: f32[128,128], index: 1, kind: input, shape index: {}]   ;;  %s236_s2 = inlined_call_operand.hbm [shape: f32[8,128], index: 2, kind: output, shape index: {}]  }
   0x1   :  { %8 = vsyncpa [#allocation6], 0 }
   0x2   :  { %9 = vsyncpa [#allocation4], 0  ;;  %s15_s11 = sshll.u32 %s234_s0, 4  ;;  %s205_s12 = smov [#allocation2]   ;;  %s16_s11 = int_to_ptr.hbm [resolvable:$true] %s15_s11 }
   0x3   :  { %s17_s13 = sshll.u32 %s205_s12, 4  ;;  %s25_s16 = sshll.u32 %s235_s1, 4  ;;  %s18_s13 = int_to_ptr.vmem [resolvable:$true] %s17_s13  ;;  %s26_s16 = int_to_ptr.hbm [resolvable:$true] %s25_s16 }
   0x4   :  { %20 = dma.hbm_to_vmem [thread:$0]  %s16_s11, 128, %s18_s13, [#allocation3]  }
   0x5   :  { %s206_s17 = smov [#allocation5]   ;;  %s207_s19 = smov 128  }
   0x6   :  { %s27_s18 = sshll.u32 %s206_s17, 4  ;;  %s208_s20 = smov 8   ;;  %s28_s18 = int_to_ptr.vmem [resolvable:$true] %s27_s18 }
   0x7   :  { %33 = dma.hbm_to_vmem [thread:$0]  %s26_s16, 2048, %s28_s18, [#allocation6], %s207_s19, %s207_s19, %s208_s20  }
   0x8   :  { %199 = dma.done.wait [#allocation3], 128  }
   0x9   :  { %200 = vsyncadd [#allocation3], 4294967168 }
   0xa   :  { %201 = dma.done.wait [#allocation6], 2048  }
   0xb   :  { %202 = vsyncadd [#allocation6], 4294965248  ;;  %v62_v0 = vld [vmem:[#allocation5 + $0x78] sm:$0xff]  ;;  %v61_v1 = vld [vmem:[#allocation5 + $0x70] sm:$0xff]  ;;  %s209_s0 = smov [#allocation7]   ;;  %s110_s23 = sshll.u32 %s236_s2, 4  ;;  %s111_s23 = int_to_ptr.hbm [resolvable:$true] %s110_s23 }
   0xc   :  { %v78_v2 = vmul.f32 %v62_v0, %v62_v0  ;;  %v77_v3 = vmul.f32 %v61_v1, %v61_v1  ;;  %v60_v4 = vld [vmem:[#allocation5 + $0x68] sm:$0xff]  ;;  %v59_v6 = vld [vmem:[#allocation5 + $0x60] sm:$0xff]  ;;  %v58_v8 = vld [vmem:[#allocation5 + $0x58] sm:$0xff]  ;;  %s108_s1 = sshll.u32 %s209_s0, 4  ;;  %s109_s1 = int_to_ptr.vmem [resolvable:$true] %s108_s1 }
   0xd   :  { %v76_v5 = vmul.f32 %v60_v4, %v60_v4  ;;  %v75_v7 = vmul.f32 %v59_v6, %v59_v6  ;;  %v74_v9 = vmul.f32 %v58_v8, %v58_v8  ;;  %v57_v10 = vld [vmem:[#allocation5 + $0x50] sm:$0xff]  ;;  %v56_v12 = vld [vmem:[#allocation5 + $0x48] sm:$0xff]  ;;  %v55_v14 = vld [vmem:[#allocation5 + $0x40] sm:$0xff] }
   0xe   :  { %81 = vmatpush.xpose.msra.mxu0 %v78_v2  ;;  %v73_v11 = vmul.f32 %v57_v10, %v57_v10  ;;  %v72_v13 = vmul.f32 %v56_v12, %v56_v12  ;;  %v71_v15 = vmul.f32 %v55_v14, %v55_v14  ;;  %v54_v16 = vld [vmem:[#allocation5 + $0x38] sm:$0xff]  ;;  %v53_v18 = vld [vmem:[#allocation5 + $0x30] sm:$0xff]  ;;  %v52_v20 = vld [vmem:[#allocation5 + $0x28] sm:$0xff] }
   0xf   :  { %v70_v17 = vmul.f32 %v54_v16, %v54_v16  ;;  %v69_v19 = vmul.f32 %v53_v18, %v53_v18  ;;  %v68_v21 = vmul.f32 %v52_v20, %v52_v20  ;;  %v51_v22 = vld [vmem:[#allocation5 + $0x20] sm:$0xff]  ;;  %v50_v24 = vld [vmem:[#allocation5 + $0x18] sm:$0xff]  ;;  %v49_v26 = vld [vmem:[#allocation5 + $0x10] sm:$0xff] }
  0x10   :  { %v67_v23 = vmul.f32 %v51_v22, %v51_v22  ;;  %v66_v25 = vmul.f32 %v50_v24, %v50_v24  ;;  %v65_v27 = vmul.f32 %v49_v26, %v49_v26  ;;  %v48_v28 = vld [vmem:[#allocation5 + $0x8] sm:$0xff]  ;;  %v47_v30 = vld [vmem:[#allocation5] sm:$0xff]  ;;  %v79_v32 = vld [vmem:[#allocation2] sm:$0xff] }
  0x11   :  { %v64_v29 = vmul.f32 %v48_v28, %v48_v28  ;;  %v63_v31 = vmul.f32 %v47_v30, %v47_v30 }
  0x12   :  { %82 = vmatpush.xpose.msra.mxu0 %v77_v3 }
  0x16   :  { %83 = vmatpush.xpose.msra.mxu0 %v76_v5 }
  0x1a   :  { %84 = vmatpush.xpose.msra.mxu0 %v75_v7 }
  0x1e   :  { %85 = vmatpush.xpose.msra.mxu0 %v74_v9 }
  0x22   :  { %86 = vmatpush.xpose.msra.mxu0 %v73_v11 }
  0x26   :  { %87 = vmatpush.xpose.msra.mxu0 %v72_v13 }
  0x2a   :  { %88 = vmatpush.xpose.msra.mxu0 %v71_v15 }
  0x2e   :  { %89 = vmatpush.xpose.msra.mxu0 %v70_v17 }
  0x32   :  { %90 = vmatpush.xpose.msra.mxu0 %v69_v19 }
  0x36   :  { %91 = vmatpush.xpose.msra.mxu0 %v68_v21 }
  0x3a   :  { %92 = vmatpush.xpose.msra.mxu0 %v67_v23 }
  0x3e   :  { %93 = vmatpush.xpose.msra.mxu0 %v66_v25 }
  0x42   :  { %94 = vmatpush.xpose.msra.mxu0 %v65_v27 }
  0x46   :  { %95 = vmatpush.xpose.msra.mxu0 %v64_v29 }
  0x4a   :  { %96 = vmatpush.xpose.msra.mxu0 %v63_v31 }
  0x4d   :  { %97 = vmatmul.f32.vlgmr.msra.gmra.mxu0 %v79_v32 }
  0xca   :  { %v98_v33 = vpop.f32.mrf.mxu0 }
  0xcb   :  { %102 = vst [vmem:[#allocation7] sm:$0xff] %v98_v33 }
  0xcc   :  { %113 = dma.vmem_to_hbm [thread:$0]  %s109_s1, 128, %s111_s23, [#allocation4]  }
  0xcd   :  { %203 = dma.done.wait [#allocation4], 128  }
  0xce   :  { %204 = vsyncadd [#allocation4], 4294967168 }
  0xcf   :  { %118 = vsyncpa [#allocation3], 1 }
  0xd0   :  { %119 = vsyncpa [#allocation6], 1 }
  0xd1   :  { %120 = vsyncpa [#allocation4], 1 }

</bundles_post_ra>
